<compile_context>
chip_gen: v5e
topology: v5e:2x2
jax: 0.10.0
libtpu: 0.0.40
codegen_flags: <defaults>
</compile_context>

<pallas_src>
from functools import partial

import jax
import jax.numpy as jnp
from jax.experimental import pallas as pl
from jax.experimental.pallas import tpu as pltpu

CONCAT_NFRAMES = 7
INPUT_DIM = 39 * CONCAT_NFRAMES   # 273 (as in the source file)
OUTPUT_DIM = 64
BATCH = 256                        # many frames flattened into the batch dim


def _round_up(x, m):
    return (x + m - 1) // m * m


def linear_relu_kernel(x_ref, w_ref, b_ref, o_ref):
    # x_ref: (TM, K) f32, w_ref: (K, N_pad) bf16, b_ref: (1, N_pad) f32
    # y = relu(x @ W + b); bf16 MXU matmul with f32 accumulation, bias/ReLU in f32.
    x = x_ref[...].astype(jnp.bfloat16)
    acc = jnp.dot(x, w_ref[...], preferred_element_type=jnp.float32)
    acc = acc + b_ref[...]                       # bias broadcast over batch (f32)
    o_ref[...] = jnp.maximum(acc, 0.0).astype(o_ref.dtype)


def prepare_basic_block_params(weight, bias):
    """One-time parameter prep (do this at load time, not per forward call).

    weight: (N, K) float32 (PyTorch nn.Linear convention)
    bias:   (N,)   float32
    Returns:
      w_p: (K, N_pad) bfloat16, transposed + zero-padded to N_pad = 128-multiple
      b_p: (1, N_pad) float32, zero-padded
    K is left at its natural size (Mosaic pads the contraction lane internally).
    """
    N, K = weight.shape
    N_pad = max(_round_up(N, 128), 128)
    w_p = jnp.zeros((K, N_pad), jnp.bfloat16)
    w_p = w_p.at[:, :N].set(weight.T.astype(jnp.bfloat16))
    b_p = jnp.zeros((1, N_pad), jnp.float32)
    b_p = b_p.at[0, :N].set(bias.astype(jnp.float32))
    return w_p, b_p


@partial(jax.jit, static_argnames=("n_out", "full_output"))
def basic_block_forward(x, w_p, b_p, *, n_out, full_output=False):
    """Pallas implementation of BasicBlock.forward: ReLU(Linear(x)).

    x:   (B, K) float32 (fed to the kernel as-is; cast to bf16 in-kernel)
    w_p: (K, N_pad) bfloat16  (from prepare_basic_block_params)
    b_p: (1, N_pad) float32
    Returns (B, n_out) float32, or the padded (B, N_pad) slab if full_output
    (padded columns are exactly 0; padded batch rows are never exposed).
    """
    B, K = x.shape
    Kw, N_pad = w_p.shape
    assert Kw == K

    # Batch tiling: one big tile up to 512 rows (per-grid-step overhead dominates
    # at this size); for very large batches the grid splits across v7x's 2 TCs.
    TM = min(512, _round_up(B, 8))
    B_pad = _round_up(B, TM)

    # Only pad the batch dim when it is not tile-aligned (no-op for B=256 / B=8).
    if B_pad != B:
        x_in = jnp.zeros((B_pad, K), x.dtype).at[:B, :].set(x)
    else:
        x_in = x

    out = pl.pallas_call(
        linear_relu_kernel,
        out_shape=jax.ShapeDtypeStruct((B_pad, N_pad), jnp.float32),
        grid=(B_pad // TM,),
        in_specs=[
            pl.BlockSpec((TM, K), lambda i: (i, 0)),        # stream f32 batch tiles
            pl.BlockSpec((K, N_pad), lambda i: (0, 0)),     # weight resident in VMEM
            pl.BlockSpec((1, N_pad), lambda i: (0, 0)),     # bias resident in VMEM
        ],
        out_specs=pl.BlockSpec((TM, N_pad), lambda i: (i, 0)),  # lane-dense store
        compiler_params=pltpu.CompilerParams(
            dimension_semantics=("parallel",)),              # megacore on v7x
    )(x_in, w_p, b_p)

    if full_output and B_pad == B:
        return out              # padded N columns are exactly 0; no extra copy
    return out[:B, :n_out]


def _reference(x, weight, bias, n_out):
    # Reference with the same bf16-quantized activations/weights, math in f32.
    xf = x.astype(jnp.bfloat16).astype(jnp.float32)
    wf = weight.astype(jnp.bfloat16).astype(jnp.float32)
    return jnp.maximum(xf @ wf.T + bias, 0.0)[:, :n_out]


if __name__ == "__main__":
    key = jax.random.PRNGKey(0)
    kx, kw, kb, kx2 = jax.random.split(key, 4)

    # Deterministic synthetic parameters (shapes from nn.Linear(input_dim, output_dim)).
    weight = jax.random.normal(kw, (OUTPUT_DIM, INPUT_DIM), dtype=jnp.float32) * 0.05
    bias = jax.random.normal(kb, (OUTPUT_DIM,), dtype=jnp.float32) * 0.05
    w_p, b_p = prepare_basic_block_params(weight, bias)

    # Batched case (single grid step, TM=256 tile on the MXU).
    x = jax.random.normal(kx, (BATCH, INPUT_DIM), dtype=jnp.float32)
    y = jax.block_until_ready(basic_block_forward(x, w_p, b_p, n_out=OUTPUT_DIM))
    y_ref = _reference(x, weight, bias, OUTPUT_DIM)
    assert y.shape == (BATCH, OUTPUT_DIM)
    assert jnp.allclose(y, y_ref, atol=1e-2, rtol=1e-2)

    # Padded-slab path (for chaining blocks without a post-kernel slice).
    y_full = jax.block_until_ready(
        basic_block_forward(x, w_p, b_p, n_out=OUTPUT_DIM, full_output=True))
    assert y_full.shape == (BATCH, 128)
    assert jnp.allclose(y_full[:, :OUTPUT_DIM], y_ref, atol=1e-2, rtol=1e-2)
    assert jnp.all(y_full[:, OUTPUT_DIM:] == 0.0)

    # Small-batch case (single 8-row grid step, f32 input cast in-kernel).
    x_small = jax.random.normal(kx2, (8, INPUT_DIM), dtype=jnp.float32)
    y_small = jax.block_until_ready(
        basic_block_forward(x_small, w_p, b_p, n_out=OUTPUT_DIM))
    y_small_ref = _reference(x_small, weight, bias, OUTPUT_DIM)
    assert y_small.shape == (8, OUTPUT_DIM)
    assert jnp.allclose(y_small, y_small_ref, atol=1e-2, rtol=1e-2)

    print("KERNEL_OK")
</pallas_src>

<mosaic_0001>
module attributes {stable_mosaic.version = 11 : i64} {
  func.func @linear_relu_kernel(%arg0: i32, %arg1: memref<256x273xf32, #tpu.memory_space<vmem>>, %arg2: memref<273x128xbf16, #tpu.memory_space<vmem>>, %arg3: memref<1x128xf32, #tpu.memory_space<vmem>>, %arg4: memref<256x128xf32, #tpu.memory_space<vmem>>) attributes {dimension_semantics = [#tpu.dimension_semantics<parallel>], iteration_bounds = array<i64: 1>, scalar_prefetch = 0 : i64, scratch_operands = 0 : i64, tpu.core_type = #tpu.core_type<tc>, window_params = [{transform_indices = @transform_0, window_bounds = array<i64: 256, 273>}, {pipeline_mode = #tpu.pipeline_mode<synchronous>, transform_indices = @transform_1, window_bounds = array<i64: 273, 128>}, {pipeline_mode = #tpu.pipeline_mode<synchronous>, transform_indices = @transform_2, window_bounds = array<i64: 1, 128>}, {transform_indices = @transform_3, window_bounds = array<i64: 256, 128>}]} {
    %c0 = arith.constant 0 : index
    %c0_0 = arith.constant 0 : index
    %0 = vector.load %arg1[%c0, %c0_0] : memref<256x273xf32, #tpu.memory_space<vmem>>, vector<256x273xf32>
    %1 = arith.truncf %0 : vector<256x273xf32> to vector<256x273xbf16>
    %c0_1 = arith.constant 0 : index
    %c0_2 = arith.constant 0 : index
    %2 = vector.load %arg2[%c0_1, %c0_2] : memref<273x128xbf16, #tpu.memory_space<vmem>>, vector<273x128xbf16>
    %cst = arith.constant dense<0.000000e+00> : vector<256x128xf32>
    %3 = tpu.matmul %1, %2, %cst {dimension_numbers = #tpu.dot_dimension_numbers<[1], [0], [0], [1], [0, 0, 1, 1], [], []>} : vector<256x273xbf16>, vector<273x128xbf16>, vector<256x128xf32> -> vector<256x128xf32>
    %c0_3 = arith.constant 0 : index
    %c0_4 = arith.constant 0 : index
    %4 = vector.load %arg3[%c0_3, %c0_4] : memref<1x128xf32, #tpu.memory_space<vmem>>, vector<1x128xf32>
    %5 = vector.broadcast %4 : vector<1x128xf32> to vector<256x128xf32>
    %6 = arith.addf %3, %5 : vector<256x128xf32>
    %cst_5 = arith.constant 0.000000e+00 : f32
    %7 = vector.broadcast %cst_5 : f32 to vector<256x128xf32>
    %8 = arith.maximumf %6, %7 : vector<256x128xf32>
    %c0_6 = arith.constant 0 : index
    %c0_7 = arith.constant 0 : index
    %9 = vector.load %arg4[%c0_6, %c0_7] : memref<256x128xf32, #tpu.memory_space<vmem>>, vector<256x128xf32>
    tpu.vector_store %arg4[%c0_6, %c0_7], %8 {strides = array<i32>} : memref<256x128xf32, #tpu.memory_space<vmem>>, vector<256x128xf32>,
    return
  }
  func.func @transform_0(%arg0: i32) -> (i32, i32) {
    %c0_i32 = arith.constant 0 : i32
    %c0_i32_0 = arith.constant 0 : i32
    return %arg0, %c0_i32 : i32, i32
  }
  func.func @transform_1(%arg0: i32) -> (i32, i32) {
    %c0_i32 = arith.constant 0 : i32
    %c0_i32_0 = arith.constant 0 : i32
    %c0_i32_1 = arith.constant 0 : i32
    return %c0_i32, %c0_i32_0 : i32, i32
  }
  func.func @transform_2(%arg0: i32) -> (i32, i32) {
    %c0_i32 = arith.constant 0 : i32
    %c0_i32_0 = arith.constant 0 : i32
    %c0_i32_1 = arith.constant 0 : i32
    return %c0_i32, %c0_i32_0 : i32, i32
  }
  func.func @transform_3(%arg0: i32) -> (i32, i32) {
    %c0_i32 = arith.constant 0 : i32
    %c0_i32_0 = arith.constant 0 : i32
    return %arg0, %c0_i32 : i32, i32
  }
}

</mosaic_0001>

<bundles_post_ra>
// kernel: basic_block_forward.1
= control target key start
LH: loop header
LB: loop body
LE: loop exit
PB: predicated region body
PF: predicated region fallthrough
CT: control target
= control target key end

     0   :  { %vm352_vm0 = vcmask 1040384   ;;  %v814_v5 = vmov 0   ;;  %vm303_vm1 = vcmask 138240   ;;  %s1374_s1 = inlined_call_operand.vmem [shape: bf16[273,128], index: 1, kind: input, shape index: {}]   ;;  %s1375_s0 = inlined_call_operand.vmem [shape: f32[256,273], index: 0, kind: input, shape index: {}]   ;;  %s1376_s2 = inlined_call_operand.vmem [shape: f32[1,128], index: 2, kind: input, shape index: {}]   ;;  %s1377_s3 = inlined_call_operand.vmem [shape: f32[256,128], index: 3, kind: output, shape index: {}]  }
   0x1   :  { %v784_v0 = vld [vmem:[%s1374_s1 + $0x38] sm:$0xff]  ;;  %v193_v2 = vld [vmem:[%s1374_s1 + $0x88] sm:$0x1]  ;;  %v783_v3 = vld [vmem:[%s1374_s1 + $0x30] sm:$0xff]  ;;  %v354_v6 = vsel %vm352_vm0, 65535, %v814_v5 }
   0x2   :  { %v841_v1 = vld [vmem:[%s1374_s1 + $0x78] sm:$0xff]  ;;  %358 = vmatpush.bf16.msra.mxu0 %v784_v0  ;;  %794 = vmatpush.bf16.msra.mxu3 %v784_v0  ;;  %v267_v4 = vunpack.c.l.b16 %v193_v2  ;;  %v791_v7 = vld [vmem:[%s1374_s1 + $0x70] sm:$0xff]  ;;  %v782_v10 = vld [vmem:[%s1374_s1 + $0x28] sm:$0xff] }
   0x3   :  { %447 = vmatpush.bf16.msra.mxu1 %v841_v1  ;;  %v790_v11 = vld [vmem:[%s1374_s1 + $0x68] sm:$0xff]  ;;  %v865_v12 = vld [vmem:[%s1374_s1 + $0x80] sm:$0xff]  ;;  %v17_v13 = vld [vmem:[%s1375_s0 + $0x10] sm:$0xff] }
   0x4   :  { %v285_v8 = vpack.c.b16 %v267_v4, %v267_v4  ;;  %v20_v14 = vld [vmem:[%s1375_s0 + $0x28] sm:$0xff]  ;;  %v781_v15 = vld [vmem:[%s1374_s1 + $0x20] sm:$0xff]  ;;  %v780_v18 = vld [vmem:[%s1374_s1 + $0x18] sm:$0xff] }
   0x5   :  { %v113_v16 = vpack.c.bf16 %v20_v14, %v17_v13  ;;  %v789_v17 = vld [vmem:[%s1374_s1 + $0x60] sm:$0xff]  ;;  %v788_v19 = vld [vmem:[%s1374_s1 + $0x58] sm:$0xff]  ;;  %v779_v20 = vld [vmem:[%s1374_s1 + $0x10] sm:$0xff] }
   0x6   :  { %359 = vmatpush.bf16.msra.mxu0 %v783_v3  ;;  %795 = vmatpush.bf16.msra.mxu3 %v783_v3  ;;  %v853_v9 = vand.u32 %v354_v6, %v285_v8  ;;  %v787_v21 = vld [vmem:[%s1374_s1 + $0x50] sm:$0xff]  ;;  %v778_v22 = vld [vmem:[%s1374_s1 + $0x8] sm:$0xff]  ;;  %v23_v24 = vld [vmem:[%s1375_s0 + $0x40] sm:$0xff] }
   0x7   :  { %448 = vmatpush.bf16.msra.mxu1 %v791_v7  ;;  %v786_v23 = vld [vmem:[%s1374_s1 + $0x48] sm:$0xff]  ;;  %v26_v25 = vld [vmem:[%s1375_s0 + $0x58] sm:$0xff]  ;;  %v777_v26 = vld [vmem:[%s1374_s1] sm:$0xff] }
   0x8   :  { %542 = vmatpush.bf16.msra.mxu2 %v853_v9  ;;  %v15_v27 = vld [vmem:[%s1375_s0] sm:$0xff]  ;;  %v18_v28 = vld [vmem:[%s1375_s0 + $0x18] sm:$0xff]  ;;  %v116_v31 = vpack.c.bf16 %v26_v25, %v23_v24  ;;  %v16_v33 = vld [vmem:[%s1375_s0 + $0x8] sm:$0xff] }
   0x9   :  { %v87_v29 = vld [vmem:[%s1375_s0 + $0x240] sm:$0xff]  ;;  %v90_v30 = vld [vmem:[%s1375_s0 + $0x258] sm:$0xff]  ;;  %v111_v35 = vpack.c.bf16 %v18_v28, %v15_v27  ;;  %v29_v38 = vld [vmem:[%s1375_s0 + $0x70] sm:$0xff] }
   0xa   :  { %360 = vmatpush.bf16.msra.mxu0 %v782_v10  ;;  %796 = vmatpush.bf16.msra.mxu3 %v782_v10  ;;  %v785_v32 = vld [vmem:[%s1374_s1 + $0x40] sm:$0xff]  ;;  %v147_v36 = vpack.c.bf16 %v90_v30, %v87_v29  ;;  %v32_v39 = vld [vmem:[%s1375_s0 + $0x88] sm:$0xff]  ;;  %v21_v40 = vld [vmem:[%s1375_s0 + $0x30] sm:$0xff] }
   0xb   :  { %449 = vmatpush.bf16.msra.mxu1 %v790_v11  ;;  %v19_v34 = vld [vmem:[%s1375_s0 + $0x20] sm:$0xff]  ;;  %v24_v41 = vld [vmem:[%s1375_s0 + $0x48] sm:$0xff]  ;;  %v93_v42 = vld [vmem:[%s1375_s0 + $0x270] sm:$0xff]  ;;  %v119_v44 = vpack.c.bf16 %v32_v39, %v29_v38 }
   0xc   :  { %543 = vmatpush.bf16.msra.mxu2 %v865_v12  ;;  %v112_v37 = vpack.c.bf16 %v19_v34, %v16_v33  ;;  %v96_v43 = vld [vmem:[%s1375_s0 + $0x288] sm:$0xff]  ;;  %v22_v45 = vld [vmem:[%s1375_s0 + $0x38] sm:$0xff]  ;;  %v25_v46 = vld [vmem:[%s1375_s0 + $0x50] sm:$0xff]  ;;  %v114_v47 = vpack.c.bf16 %v24_v41, %v21_v40 }
   0xd   :  { %v150_v48 = vpack.c.bf16 %v96_v43, %v93_v42  ;;  %v115_v49 = vpack.c.bf16 %v25_v46, %v22_v45  ;;  %v35_v50 = vld [vmem:[%s1375_s0 + $0xa0] sm:$0xff]  ;;  %v38_v51 = vld [vmem:[%s1375_s0 + $0xb8] sm:$0xff]  ;;  %v28_v57 = vld [vmem:[%s1375_s0 + $0x68] sm:$0xff] }
   0xe   :  { %361 = vmatpush.bf16.msra.mxu0 %v781_v15  ;;  %797 = vmatpush.bf16.msra.mxu3 %v781_v15  ;;  %v27_v52 = vld [vmem:[%s1375_s0 + $0x60] sm:$0xff]  ;;  %v30_v53 = vld [vmem:[%s1375_s0 + $0x78] sm:$0xff]  ;;  %v122_v56 = vpack.c.bf16 %v38_v51, %v35_v50  ;;  %v41_v62 = vld [vmem:[%s1375_s0 + $0xd0] sm:$0xff] }
   0xf   :  { %761 = vmatmul.msk.bf16.vlgmr.msra.gmra.mxu2 %vm303_vm1, %v113_v16  ;;  %450 = vmatpush.bf16.msra.mxu1 %v789_v17  ;;  %v99_v54 = vld [vmem:[%s1375_s0 + $0x2a0] sm:$0xff]  ;;  %v102_v55 = vld [vmem:[%s1375_s0 + $0x2b8] sm:$0xff]  ;;  %v117_v59 = vpack.c.bf16 %v30_v53, %v27_v52  ;;  %v44_v63 = vld [vmem:[%s1375_s0 + $0xe8] sm:$0xff] }
  0x10   :  { %v31_v58 = vld [vmem:[%s1375_s0 + $0x80] sm:$0xff]  ;;  %v153_v60 = vpack.c.bf16 %v102_v55, %v99_v54  ;;  %v33_v0 = vld [vmem:[%s1375_s0 + $0x90] sm:$0xff]  ;;  %v108_v3 = vld [vmem:[%s1375_s0 + $0x2e8] sm:$0xff]  ;;  %v125_v4 = vpack.c.bf16 %v44_v63, %v41_v62 }
  0x11   :  { %v118_v61 = vpack.c.bf16 %v31_v58, %v28_v57  ;;  %v105_v2 = vld [vmem:[%s1375_s0 + $0x2d0] sm:$0xff]  ;;  %v34_v5 = vld [vmem:[%s1375_s0 + $0x98] sm:$0xff]  ;;  %v47_v10 = vld [vmem:[%s1375_s0 + $0x100] sm:$0xff] }
  0x12   :  { %362 = vmatpush.bf16.msra.mxu0 %v780_v18  ;;  %798 = vmatpush.bf16.msra.mxu3 %v780_v18  ;;  %v37_v6 = vld [vmem:[%s1375_s0 + $0xb0] sm:$0xff]  ;;  %v156_v8 = vpack.c.bf16 %v108_v3, %v105_v2  ;;  %v42_v13 = vld [vmem:[%s1375_s0 + $0xd8] sm:$0xff]  ;;  %v88_v14 = vld [vmem:[%s1375_s0 + $0x248] sm:$0xff] }
  0x13   :  { %451 = vmatpush.bf16.msra.mxu1 %v788_v19  ;;  %v91_v15 = vld [vmem:[%s1375_s0 + $0x260] sm:$0xff]  ;;  %v45_v24 = vld [vmem:[%s1375_s0 + $0xf0] sm:$0xff]  ;;  %v48_v25 = vld [vmem:[%s1375_s0 + $0x108] sm:$0xff] }
  0x14   :  { %v43_v18 = vld [vmem:[%s1375_s0 + $0xe0] sm:$0xff]  ;;  %v97_v27 = vld [vmem:[%s1375_s0 + $0x290] sm:$0xff]  ;;  %v46_v29 = vld [vmem:[%s1375_s0 + $0xf8] sm:$0xff] }
  0x15   :  { %v49_v30 = vld [vmem:[%s1375_s0 + $0x110] sm:$0xff]  ;;  %v59_v34 = vld [vmem:[%s1375_s0 + $0x160] sm:$0xff]  ;;  %v100_v38 = vld [vmem:[%s1375_s0 + $0x2a8] sm:$0xff] }
  0x16   :  { %363 = vmatpush.bf16.msra.mxu0 %v779_v20  ;;  %799 = vmatpush.bf16.msra.mxu3 %v779_v20  ;;  %v148_v20 = vpack.c.bf16 %v91_v15, %v88_v14  ;;  %v127_v33 = vpack.c.bf16 %v49_v30, %v46_v29  ;;  %v103_v39 = vld [vmem:[%s1375_s0 + $0x2c0] sm:$0xff]  ;;  %v52_v41 = vld [vmem:[%s1375_s0 + $0x128] sm:$0xff]  ;;  %v65_v46 = vld [vmem:[%s1375_s0 + $0x190] sm:$0xff] }
  0x17   :  { %452 = vmatpush.bf16.msra.mxu1 %v787_v21  ;;  %v55_v42 = vld [vmem:[%s1375_s0 + $0x140] sm:$0xff]  ;;  %v106_v50 = vld [vmem:[%s1375_s0 + $0x2d8] sm:$0xff]  ;;  %v109_v51 = vld [vmem:[%s1375_s0 + $0x2f0] sm:$0xff] }
  0x18   :  { %v130_v45 = vpack.c.bf16 %v55_v42, %v52_v41  ;;  %v58_v53 = vld [vmem:[%s1375_s0 + $0x158] sm:$0xff]  ;;  %v61_v54 = vld [vmem:[%s1375_s0 + $0x170] sm:$0xff]  ;;  %v1129_v3 = vld [vmem:[%s1376_s2] ss:$0 sm:$0xff] }
  0x19   :  { %v133_v57 = vpack.c.bf16 %v61_v54, %v58_v53  ;;  %v66_v63 = vld [vmem:[%s1375_s0 + $0x198] sm:$0xff] }
  0x1a   :  { %364 = vmatpush.bf16.msra.mxu0 %v778_v22  ;;  %800 = vmatpush.bf16.msra.mxu3 %v778_v22  ;;  %v53_v22 = vld [vmem:[%s1375_s0 + $0x130] sm:$0xff]  ;;  %v70_v30 = vld [vmem:[%s1375_s0 + $0x1b8] sm:$0xff] }
  0x1b   :  { %453 = vmatpush.bf16.msra.mxu1 %v786_v23  ;;  %v78_v53 = vld [vmem:[%s1375_s0 + $0x1f8] sm:$0xff] }
  0x1e   :  { %365 = vmatpush.bf16.msra.mxu0 %v777_v26  ;;  %801 = vmatpush.bf16.msra.mxu3 %v777_v26  ;;  %v94_v26 = vld [vmem:[%s1375_s0 + $0x278] sm:$0xff] }
  0x1f   :  { %762 = vmatmul.msk.bf16.gmra.mxu2 %vm303_vm1, %v116_v31  ;;  %454 = vmatpush.bf16.msra.mxu1 %v785_v32  ;;  %v126_v31 = vpack.c.bf16 %v48_v25, %v45_v24  ;;  %v72_v25 = vld [vmem:[%s1375_s0 + $0x1c8] sm:$0xff] }
  0x21   :  { %366 = vmatmul.bf16.vlgmr.msra.gmra.mxu0 %v111_v35  ;;  %426 = vmatmul.bf16.vlgmr.msra.gmra.mxu3 %v147_v36  ;;  %v62_v35 = vld [vmem:[%s1375_s0 + $0x178] sm:$0xff]  ;;  %v51_v36 = vld [vmem:[%s1375_s0 + $0x120] sm:$0xff] }
  0x22   :  { %802 = vmatpush.bf16.msrb.mxu3 %v841_v1  ;;  %455 = vmatmul.bf16.vlgmr.msra.gmra.mxu1 %v112_v37  ;;  %v36_v1 = vld [vmem:[%s1375_s0 + $0xa8] sm:$0xff]  ;;  %v54_v37 = vld [vmem:[%s1375_s0 + $0x138] sm:$0xff]  ;;  %v134_v40 = vpack.c.bf16 %v62_v35, %v59_v34 }
  0x23   :  { %v129_v43 = vpack.c.bf16 %v54_v37, %v51_v36 }
  0x26   :  { %803 = vmatpush.bf16.msrb.mxu3 %v791_v7  ;;  %v120_v7 = vpack.c.bf16 %v36_v1, %v33_v0  ;;  %v101_v0 = vld [vmem:[%s1375_s0 + $0x2b0] sm:$0xff]  ;;  %v104_v1 = vld [vmem:[%s1375_s0 + $0x2c8] sm:$0xff] }
  0x2a   :  { %804 = vmatpush.bf16.msrb.mxu3 %v790_v11  ;;  %v50_v11 = vld [vmem:[%s1375_s0 + $0x118] sm:$0xff] }
  0x2b   :  { %v128_v16 = vpack.c.bf16 %v50_v11, %v47_v10 }
  0x2e   :  { %805 = vmatpush.bf16.msrb.mxu3 %v789_v17  ;;  %v40_v17 = vld [vmem:[%s1375_s0 + $0xc8] sm:$0xff] }
  0x2f   :  { %763 = vmatmul.msk.bf16.gmra.mxu2 %vm303_vm1, %v119_v44  ;;  %v154_v44 = vpack.c.bf16 %v103_v39, %v100_v38 }
  0x31   :  { %371 = vmatmul.bf16.gmra.mxu0 %v114_v47  ;;  %431 = vmatmul.bf16.gmra.mxu3 %v150_v48  ;;  %v68_v47 = vld [vmem:[%s1375_s0 + $0x1a8] sm:$0xff]  ;;  %v57_v48 = vld [vmem:[%s1375_s0 + $0x150] sm:$0xff] }
  0x32   :  { %806 = vmatpush.bf16.msrb.mxu3 %v788_v19  ;;  %460 = vmatmul.bf16.gmra.mxu1 %v115_v49  ;;  %v60_v49 = vld [vmem:[%s1375_s0 + $0x168] sm:$0xff]  ;;  %v137_v52 = vpack.c.bf16 %v68_v47, %v65_v46 }
  0x33   :  { %v132_v55 = vpack.c.bf16 %v60_v49, %v57_v48  ;;  %v83_v48 = vld [vmem:[%s1375_s0 + $0x220] sm:$0xff]  ;;  %v86_v49 = vld [vmem:[%s1375_s0 + $0x238] sm:$0xff] }
  0x36   :  { %807 = vmatpush.bf16.msrb.mxu3 %v787_v21  ;;  %v124_v21 = vpack.c.bf16 %v43_v18, %v40_v17 }
  0x3a   :  { %808 = vmatpush.bf16.msrb.mxu3 %v786_v23  ;;  %v56_v23 = vld [vmem:[%s1375_s0 + $0x148] sm:$0xff] }
  0x3b   :  { %v131_v28 = vpack.c.bf16 %v56_v23, %v53_v22  ;;  %v69_v23 = vld [vmem:[%s1375_s0 + $0x1b0] sm:$0xff] }
  0x3c   :  { %v138_v34 = vpack.c.bf16 %v72_v25, %v69_v23 }
  0x3e   :  { %809 = vmatpush.bf16.msrb.mxu3 %v785_v32  ;;  %v151_v32 = vpack.c.bf16 %v97_v27, %v94_v26  ;;  %v107_v26 = vld [vmem:[%s1375_s0 + $0x2e0] sm:$0xff]  ;;  %v110_v27 = vld [vmem:[%s1375_s0 + $0x2f8] sm:$0xff] }
  0x3f   :  { %764 = vmatmul.msk.bf16.gmra.mxu2 %vm303_vm1, %v122_v56  ;;  %v157_v56 = vpack.c.bf16 %v109_v51, %v106_v50  ;;  %v158_v35 = vpack.c.bf16 %v110_v27, %v107_v26 }
  0x41   :  { %376 = vmatmul.bf16.gmra.mxu0 %v117_v59  ;;  %436 = vmatmul.bf16.gmra.mxu3 %v153_v60  ;;  %v71_v59 = vld [vmem:[%s1375_s0 + $0x1c0] sm:$0xff]  ;;  %v74_v60 = vld [vmem:[%s1375_s0 + $0x1d8] sm:$0xff] }
  0x42   :  { %810 = vmatpush.bf16.msra.mxu3 %v853_v9  ;;  %465 = vmatmul.bf16.gmra.mxu1 %v118_v61  ;;  %v121_v9 = vpack.c.bf16 %v37_v6, %v34_v5  ;;  %v63_v61 = vld [vmem:[%s1375_s0 + $0x180] sm:$0xff]  ;;  %v140_v2 = vpack.c.bf16 %v74_v60, %v71_v59 }
  0x43   :  { %v67_v5 = vld [vmem:[%s1375_s0 + $0x1a0] sm:$0xff]  ;;  %v135_v6 = vpack.c.bf16 %v66_v63, %v63_v61 }
  0x46   :  { %811 = vmatpush.bf16.msra.mxu3 %v865_v12  ;;  %v39_v12 = vld [vmem:[%s1375_s0 + $0xc0] sm:$0xff] }
  0x47   :  { %v123_v19 = vpack.c.bf16 %v42_v13, %v39_v12 }
  0x4f   :  { %765 = vmatmul.msk.bf16.gmra.mxu2 %vm303_vm1, %v125_v4  ;;  %v64_v4 = vld [vmem:[%s1375_s0 + $0x188] sm:$0xff] }
  0x51   :  { %381 = vmatmul.bf16.gmra.mxu0 %v120_v7  ;;  %441 = vmatmul.bf16.gmra.mxu3 %v156_v8  ;;  %v155_v7 = vpack.c.bf16 %v104_v1, %v101_v0 }
  0x52   :  { %470 = vmatmul.bf16.gmra.mxu1 %v121_v9  ;;  %v136_v9 = vpack.c.bf16 %v67_v5, %v64_v4 }
  0x5f   :  { %766 = vmatmul.msk.bf16.gmra.mxu2 %vm303_vm1, %v128_v16 }
  0x61   :  { %386 = vmatmul.bf16.gmra.mxu0 %v123_v19  ;;  %515 = vmatmul.bf16.vlgmr.msrb.gmra.mxu3 %v148_v20  ;;  %v77_v20 = vld [vmem:[%s1375_s0 + $0x1f0] sm:$0xff] }
  0x62   :  { %475 = vmatmul.bf16.gmra.mxu1 %v124_v21  ;;  %v80_v21 = vld [vmem:[%s1375_s0 + $0x208] sm:$0xff] }
  0x63   :  { %v143_v29 = vpack.c.bf16 %v80_v21, %v77_v20  ;;  %v85_v20 = vld [vmem:[%s1375_s0 + $0x230] sm:$0xff] }
  0x6f   :  { %767 = vmatmul.msk.bf16.gmra.mxu2 %vm303_vm1, %v131_v28 }
  0x71   :  { %391 = vmatmul.bf16.gmra.mxu0 %v126_v31  ;;  %520 = vmatmul.bf16.gmra.mxu3 %v151_v32  ;;  %v73_v31 = vld [vmem:[%s1375_s0 + $0x1d0] sm:$0xff] }
  0x72   :  { %480 = vmatmul.bf16.gmra.mxu1 %v127_v33  ;;  %v139_v37 = vpack.c.bf16 %v73_v31, %v70_v30 }
  0x7f   :  { %768 = vmatmul.msk.bf16.gmra.mxu2 %vm303_vm1, %v134_v40 }
  0x81   :  { %396 = vmatmul.bf16.gmra.mxu0 %v129_v43  ;;  %525 = vmatmul.bf16.gmra.mxu3 %v154_v44 }
  0x82   :  { %485 = vmatmul.bf16.gmra.mxu1 %v130_v45 }
  0x8f   :  { %769 = vmatmul.msk.bf16.gmra.mxu2 %vm303_vm1, %v137_v52  ;;  %v75_v52 = vld [vmem:[%s1375_s0 + $0x1e0] sm:$0xff] }
  0x90   :  { %v141_v60 = vpack.c.bf16 %v78_v53, %v75_v52 }
  0x91   :  { %401 = vmatmul.bf16.gmra.mxu0 %v132_v55  ;;  %530 = vmatmul.bf16.gmra.mxu3 %v157_v56  ;;  %v146_v55 = vpack.c.bf16 %v86_v49, %v83_v48  ;;  %v76_v56 = vld [vmem:[%s1375_s0 + $0x1e8] sm:$0xff] }
  0x92   :  { %v545_v58 = vpop.f32.mrf.mxu2  ;;  %490 = vmatmul.bf16.gmra.mxu1 %v133_v57  ;;  %v79_v57 = vld [vmem:[%s1375_s0 + $0x200] sm:$0xff] }
  0x9a   :  { %v547_v62 = vpop.f32.mrf.mxu2 }
  0x9e   :  { %v367_v8 = vpop.f32.mrf.mxu0 }
  0x9f   :  { %770 = vmatmul.msk.bf16.gmra.mxu2 %vm303_vm1, %v140_v2  ;;  %v368_v10 = vadd.f32 %v1129_v3, %v367_v8  ;;  %v456_v11 = vpop.f32.mrf.mxu1 }
  0xa1   :  { %v457_v12 = vadd.f32 %v456_v11, %v368_v10  ;;  %406 = vmatmul.bf16.gmra.mxu0 %v135_v6  ;;  %775 = vmatmul.msk.bf16.vlgmr.msra.gmra.mxu3 %vm303_vm1, %v155_v7  ;;  %v89_v10 = vld [vmem:[%s1375_s0 + $0x250] sm:$0xff]  ;;  %v92_v11 = vld [vmem:[%s1375_s0 + $0x268] sm:$0xff] }
  0xa2   :  { %v550_v13 = vpop.f32.mrf.mxu2  ;;  %495 = vmatmul.bf16.gmra.mxu1 %v136_v9 }
  0xa3   :  { %v546_v14 = vadd.f32 %v545_v58, %v457_v12 }
  0xa4   :  { %v1140_v15 = vpop.f32.mrf.mxu3 }
  0xa5   :  { %v625_v16 = vmax.f32 %v546_v14, 0.0  ;;  %v81_v14 = vld [vmem:[%s1375_s0 + $0x210] sm:$0xff] }
  0xa6   :  { %v369_v17 = vpop.f32.mrf.mxu0 }
  0xa7   :  { %657 = vst [vmem:[%s1377_s3] sm:$0xff] %v625_v16  ;;  %v370_v18 = vadd.f32 %v1129_v3, %v369_v17  ;;  %v458_v19 = vpop.f32.mrf.mxu1  ;;  %v84_v16 = vld [vmem:[%s1375_s0 + $0x228] sm:$0xff] }
  0xa8   :  { %v144_v23 = vpack.c.bf16 %v84_v16, %v81_v14 }
  0xa9   :  { %v459_v22 = vadd.f32 %v458_v19, %v370_v18  ;;  %v149_v18 = vpack.c.bf16 %v92_v11, %v89_v10  ;;  %v82_v19 = vld [vmem:[%s1375_s0 + $0x218] sm:$0xff] }
  0xaa   :  { %v552_v24 = vpop.f32.mrf.mxu2  ;;  %v145_v25 = vpack.c.bf16 %v85_v20, %v82_v19 }
  0xab   :  { %v548_v28 = vadd.f32 %v547_v62, %v459_v22  ;;  %v142_v62 = vpack.c.bf16 %v79_v57, %v76_v56 }
  0xac   :  { %v1170_v32 = vpop.f32.mrf.mxu3 }
  0xad   :  { %v626_v33 = vmax.f32 %v548_v28, 0.0 }
  0xae   :  { %v372_v36 = vpop.f32.mrf.mxu0 }
  0xaf   :  { %658 = vst [vmem:[%s1377_s3 + $0x8] sm:$0xff] %v626_v33  ;;  %771 = vmatmul.msk.bf16.gmra.mxu2 %vm303_vm1, %v143_v29  ;;  %v373_v38 = vadd.f32 %v1129_v3, %v372_v36  ;;  %v461_v39 = vpop.f32.mrf.mxu1 }
  0xb1   :  { %v462_v40 = vadd.f32 %v461_v39, %v373_v38  ;;  %411 = vmatmul.bf16.gmra.mxu0 %v138_v34  ;;  %776 = vmatmul.msk.bf16.gmra.mxu3 %vm303_vm1, %v158_v35  ;;  %v98_v38 = vld [vmem:[%s1375_s0 + $0x298] sm:$0xff] }
  0xb2   :  { %v555_v41 = vpop.f32.mrf.mxu2  ;;  %500 = vmatmul.bf16.gmra.mxu1 %v139_v37  ;;  %v95_v37 = vld [vmem:[%s1375_s0 + $0x280] sm:$0xff] }
  0xb3   :  { %v551_v42 = vadd.f32 %v550_v13, %v462_v40 }
  0xb4   :  { %v1178_v43 = vpop.f32.mrf.mxu3 }
  0xb5   :  { %v627_v44 = vmax.f32 %v551_v42, 0.0  ;;  %v152_v42 = vpack.c.bf16 %v98_v38, %v95_v37 }
  0xb6   :  { %v374_v45 = vpop.f32.mrf.mxu0 }
  0xb7   :  { %659 = vst [vmem:[%s1377_s3 + $0x10] sm:$0xff] %v627_v44  ;;  %v375_v46 = vadd.f32 %v1129_v3, %v374_v45  ;;  %v463_v47 = vpop.f32.mrf.mxu1 }
  0xb9   :  { %v464_v50 = vadd.f32 %v463_v47, %v375_v46 }
  0xba   :  { %v557_v51 = vpop.f32.mrf.mxu2 }
  0xbb   :  { %v553_v54 = vadd.f32 %v552_v24, %v464_v50 }
  0xbc   :  { %v1202_v58 = vpop.f32.mrf.mxu3 }
  0xbd   :  { %v628_v59 = vmax.f32 %v553_v54, 0.0  ;;  %v435_v19 = vadd.f32 %v1129_v3, %v1202_v58 }
  0xbe   :  { %v377_v61 = vpop.f32.mrf.mxu0 }
  0xbf   :  { %660 = vst [vmem:[%s1377_s3 + $0x18] sm:$0xff] %v628_v59  ;;  %772 = vmatmul.msk.bf16.gmra.mxu2 %vm303_vm1, %v146_v55  ;;  %v378_v63 = vadd.f32 %v1129_v3, %v377_v61  ;;  %v466_v0 = vpop.f32.mrf.mxu1 }
  0xc1   :  { %v467_v1 = vadd.f32 %v466_v0, %v378_v63  ;;  %416 = vmatmul.bf16.gmra.mxu0 %v141_v60 }
  0xc2   :  { %v560_v2 = vpop.f32.mrf.mxu2  ;;  %505 = vmatmul.bf16.gmra.mxu1 %v142_v62  ;;  %v430_v62 = vadd.f32 %v1129_v3, %v1170_v32 }
  0xc3   :  { %v556_v4 = vadd.f32 %v555_v41, %v467_v1 }
  0xc4   :  { %v1209_v5 = vpop.f32.mrf.mxu3 }
  0xc5   :  { %v629_v6 = vmax.f32 %v556_v4, 0.0 }
  0xc6   :  { %v379_v7 = vpop.f32.mrf.mxu0 }
  0xc7   :  { %661 = vst [vmem:[%s1377_s3 + $0x20] sm:$0xff] %v629_v6  ;;  %v380_v8 = vadd.f32 %v1129_v3, %v379_v7  ;;  %v468_v9 = vpop.f32.mrf.mxu1 }
  0xc9   :  { %v469_v12 = vadd.f32 %v468_v9, %v380_v8  ;;  %v433_v9 = vadd.f32 %v1129_v3, %v1178_v43 }
  0xca   :  { %v562_v13 = vpop.f32.mrf.mxu2 }
  0xcb   :  { %v558_v17 = vadd.f32 %v557_v51, %v469_v12  ;;  %v428_v51 = vadd.f32 %v1129_v3, %v1140_v15 }
  0xcc   :  { %v1233_v21 = vpop.f32.mrf.mxu3 }
  0xcd   :  { %v630_v22 = vmax.f32 %v558_v17, 0.0 }
  0xce   :  { %v382_v24 = vpop.f32.mrf.mxu0 }
  0xcf   :  { %662 = vst [vmem:[%s1377_s3 + $0x28] sm:$0xff] %v630_v22  ;;  %773 = vmatmul.msk.bf16.gmra.mxu2 %vm303_vm1, %v149_v18  ;;  %v383_v26 = vadd.f32 %v1129_v3, %v382_v24  ;;  %v471_v27 = vpop.f32.mrf.mxu1 }
  0xd1   :  { %v472_v28 = vadd.f32 %v471_v27, %v383_v26  ;;  %421 = vmatmul.bf16.gmra.mxu0 %v144_v23 }
  0xd2   :  { %v565_v29 = vpop.f32.mrf.mxu2  ;;  %510 = vmatmul.bf16.gmra.mxu1 %v145_v25 }
  0xd3   :  { %v561_v30 = vadd.f32 %v560_v2, %v472_v28 }
  0xd4   :  { %v1240_v31 = vpop.f32.mrf.mxu3 }
  0xd5   :  { %v631_v33 = vmax.f32 %v561_v30, 0.0 }
  0xd6   :  { %v384_v34 = vpop.f32.mrf.mxu0 }
  0xd7   :  { %663 = vst [vmem:[%s1377_s3 + $0x30] sm:$0xff] %v631_v33  ;;  %v385_v35 = vadd.f32 %v1129_v3, %v384_v34  ;;  %v473_v36 = vpop.f32.mrf.mxu1 }
  0xd9   :  { %v474_v39 = vadd.f32 %v473_v36, %v385_v35 }
  0xda   :  { %v567_v40 = vpop.f32.mrf.mxu2 }
  0xdb   :  { %v563_v41 = vadd.f32 %v562_v13, %v474_v39 }
  0xdc   :  { %v1252_v44 = vpop.f32.mrf.mxu3 }
  0xdd   :  { %v632_v45 = vmax.f32 %v563_v41, 0.0 }
  0xde   :  { %v387_v46 = vpop.f32.mrf.mxu0 }
  0xdf   :  { %664 = vst [vmem:[%s1377_s3 + $0x38] sm:$0xff] %v632_v45  ;;  %774 = vmatmul.msk.bf16.gmra.mxu2 %vm303_vm1, %v152_v42  ;;  %v388_v47 = vadd.f32 %v1129_v3, %v387_v46  ;;  %v476_v48 = vpop.f32.mrf.mxu1 }
  0xe1   :  { %v477_v49 = vadd.f32 %v476_v48, %v388_v47 }
  0xe2   :  { %v570_v50 = vpop.f32.mrf.mxu2 }
  0xe3   :  { %v566_v52 = vadd.f32 %v565_v29, %v477_v49 }
  0xe4   :  { %v516_v53 = vpop.f32.mrf.mxu3 }
  0xe5   :  { %v633_v54 = vmax.f32 %v566_v52, 0.0  ;;  %v1261_v55 = vadd.f32 %v516_v53, %v428_v51 }
  0xe6   :  { %v389_v56 = vpop.f32.mrf.mxu0 }
  0xe7   :  { %665 = vst [vmem:[%s1377_s3 + $0x40] sm:$0xff] %v633_v54  ;;  %v390_v57 = vadd.f32 %v1129_v3, %v389_v56  ;;  %v478_v59 = vpop.f32.mrf.mxu1 }
  0xe9   :  { %v479_v60 = vadd.f32 %v478_v59, %v390_v57 }
  0xea   :  { %v572_v61 = vpop.f32.mrf.mxu2 }
  0xeb   :  { %v568_v63 = vadd.f32 %v567_v40, %v479_v60 }
  0xec   :  { %v518_v15 = vpop.f32.mrf.mxu3 }
  0xed   :  { %v634_v0 = vmax.f32 %v568_v63, 0.0  ;;  %v1269_v1 = vadd.f32 %v518_v15, %v430_v62  ;;  %v438_v15 = vadd.f32 %v1129_v3, %v1209_v5 }
  0xee   :  { %v392_v2 = vpop.f32.mrf.mxu0 }
  0xef   :  { %666 = vst [vmem:[%s1377_s3 + $0x48] sm:$0xff] %v634_v0  ;;  %v393_v4 = vadd.f32 %v1129_v3, %v392_v2  ;;  %v481_v6 = vpop.f32.mrf.mxu1 }
  0xf1   :  { %v482_v7 = vadd.f32 %v481_v6, %v393_v4 }
  0xf2   :  { %v575_v8 = vpop.f32.mrf.mxu2 }
  0xf3   :  { %v571_v10 = vadd.f32 %v570_v50, %v482_v7 }
  0xf4   :  { %v521_v32 = vpop.f32.mrf.mxu3 }
  0xf5   :  { %v635_v11 = vmax.f32 %v571_v10, 0.0  ;;  %v1277_v12 = vadd.f32 %v521_v32, %v433_v9 }
  0xf6   :  { %v394_v13 = vpop.f32.mrf.mxu0 }
  0xf7   :  { %667 = vst [vmem:[%s1377_s3 + $0x50] sm:$0xff] %v635_v11  ;;  %v395_v14 = vadd.f32 %v1129_v3, %v394_v13  ;;  %v483_v16 = vpop.f32.mrf.mxu1 }
  0xf9   :  { %v484_v17 = vadd.f32 %v483_v16, %v395_v14  ;;  %v440_v14 = vadd.f32 %v1129_v3, %v1233_v21 }
  0xfa   :  { %v577_v18 = vpop.f32.mrf.mxu2 }
  0xfb   :  { %v573_v20 = vadd.f32 %v572_v61, %v484_v17 }
  0xfc   :  { %v523_v43 = vpop.f32.mrf.mxu3 }
  0xfd   :  { %v636_v22 = vmax.f32 %v573_v20, 0.0  ;;  %v1285_v23 = vadd.f32 %v523_v43, %v435_v19 }
  0xfe   :  { %v397_v24 = vpop.f32.mrf.mxu0 }
  0xff   :  { %668 = vst [vmem:[%s1377_s3 + $0x58] sm:$0xff] %v636_v22  ;;  %v398_v25 = vadd.f32 %v1129_v3, %v397_v24  ;;  %v486_v26 = vpop.f32.mrf.mxu1 }
 0x101   :  { %v487_v27 = vadd.f32 %v486_v26, %v398_v25  ;;  %v443_v26 = vadd.f32 %v1129_v3, %v1240_v31 }
 0x102   :  { %v580_v28 = vpop.f32.mrf.mxu2 }
 0x103   :  { %v576_v29 = vadd.f32 %v575_v8, %v487_v27 }
 0x104   :  { %v526_v30 = vpop.f32.mrf.mxu3 }
 0x105   :  { %v637_v33 = vmax.f32 %v576_v29, 0.0  ;;  %v527_v4 = vadd.f32 %v526_v30, %v438_v15 }
 0x106   :  { %v399_v34 = vpop.f32.mrf.mxu0 }
 0x107   :  { %669 = vst [vmem:[%s1377_s3 + $0x60] sm:$0xff] %v637_v33  ;;  %v400_v58 = vadd.f32 %v1129_v3, %v399_v34  ;;  %v488_v35 = vpop.f32.mrf.mxu1 }
 0x109   :  { %v489_v36 = vadd.f32 %v488_v35, %v400_v58 }
 0x10a   :  { %v582_v37 = vpop.f32.mrf.mxu2 }
 0x10b   :  { %v578_v38 = vadd.f32 %v577_v18, %v489_v36 }
 0x10c   :  { %v528_v39 = vpop.f32.mrf.mxu3 }
 0x10d   :  { %v638_v40 = vmax.f32 %v578_v38, 0.0  ;;  %v529_v17 = vadd.f32 %v528_v39, %v440_v14  ;;  %v445_v38 = vadd.f32 %v1129_v3, %v1252_v44 }
 0x10e   :  { %v402_v41 = vpop.f32.mrf.mxu0 }
 0x10f   :  { %670 = vst [vmem:[%s1377_s3 + $0x68] sm:$0xff] %v638_v40  ;;  %v403_v42 = vadd.f32 %v1129_v3, %v402_v41  ;;  %v491_v45 = vpop.f32.mrf.mxu1 }
 0x111   :  { %v492_v46 = vadd.f32 %v491_v45, %v403_v42 }
 0x112   :  { %v585_v47 = vpop.f32.mrf.mxu2 }
 0x113   :  { %v581_v48 = vadd.f32 %v580_v28, %v492_v46 }
 0x114   :  { %v531_v49 = vpop.f32.mrf.mxu3 }
 0x115   :  { %v639_v50 = vmax.f32 %v581_v48, 0.0  ;;  %v532_v29 = vadd.f32 %v531_v49, %v443_v26 }
 0x116   :  { %v404_v51 = vpop.f32.mrf.mxu0 }
 0x117   :  { %671 = vst [vmem:[%s1377_s3 + $0x70] sm:$0xff] %v639_v50  ;;  %v405_v52 = vadd.f32 %v1129_v3, %v404_v51  ;;  %v493_v53 = vpop.f32.mrf.mxu1 }
 0x119   :  { %v494_v54 = vadd.f32 %v493_v53, %v405_v52 }
 0x11a   :  { %v587_v56 = vpop.f32.mrf.mxu2 }
 0x11b   :  { %v583_v57 = vadd.f32 %v582_v37, %v494_v54 }
 0x11c   :  { %v533_v59 = vpop.f32.mrf.mxu3 }
 0x11d   :  { %v640_v60 = vmax.f32 %v583_v57, 0.0  ;;  %v534_v41 = vadd.f32 %v533_v59, %v445_v38 }
 0x11e   :  { %v407_v61 = vpop.f32.mrf.mxu0 }
 0x11f   :  { %672 = vst [vmem:[%s1377_s3 + $0x78] sm:$0xff] %v640_v60  ;;  %v408_v62 = vadd.f32 %v1129_v3, %v407_v61  ;;  %v496_v63 = vpop.f32.mrf.mxu1 }
 0x121   :  { %v497_v0 = vadd.f32 %v496_v63, %v408_v62 }
 0x122   :  { %v590_v2 = vpop.f32.mrf.mxu2 }
 0x123   :  { %v586_v6 = vadd.f32 %v585_v47, %v497_v0 }
 0x124   :  { %v615_v7 = vpop.f32.mrf.mxu3 }
 0x125   :  { %v641_v8 = vmax.f32 %v586_v6, 0.0  ;;  %v616_v9 = vadd.f32 %v615_v7, %v527_v4 }
 0x126   :  { %v409_v10 = vpop.f32.mrf.mxu0 }
 0x127   :  { %673 = vst [vmem:[%s1377_s3 + $0x80] sm:$0xff] %v641_v8  ;;  %v653_v32 = vmax.f32 %v616_v9, 0.0  ;;  %v410_v11 = vadd.f32 %v1129_v3, %v409_v10  ;;  %v498_v13 = vpop.f32.mrf.mxu1 }
 0x129   :  { %685 = vst [vmem:[%s1377_s3 + $0xe0] sm:$0xff] %v653_v32  ;;  %v499_v5 = vadd.f32 %v498_v13, %v410_v11 }
 0x12a   :  { %v592_v16 = vpop.f32.mrf.mxu2 }
 0x12b   :  { %v588_v18 = vadd.f32 %v587_v56, %v499_v5 }
 0x12c   :  { %v617_v19 = vpop.f32.mrf.mxu3 }
 0x12d   :  { %v642_v20 = vmax.f32 %v588_v18, 0.0  ;;  %v618_v43 = vadd.f32 %v617_v19, %v529_v17 }
 0x12e   :  { %v412_v22 = vpop.f32.mrf.mxu0 }
 0x12f   :  { %674 = vst [vmem:[%s1377_s3 + $0x88] sm:$0xff] %v642_v20  ;;  %v654_v24 = vmax.f32 %v618_v43, 0.0  ;;  %v413_v25 = vadd.f32 %v1129_v3, %v412_v22  ;;  %v501_v21 = vpop.f32.mrf.mxu1 }
 0x131   :  { %686 = vst [vmem:[%s1377_s3 + $0xe8] sm:$0xff] %v654_v24  ;;  %v502_v27 = vadd.f32 %v501_v21, %v413_v25 }
 0x132   :  { %v595_v28 = vpop.f32.mrf.mxu2 }
 0x133   :  { %v591_v30 = vadd.f32 %v590_v2, %v502_v27 }
 0x134   :  { %v620_v33 = vpop.f32.mrf.mxu3 }
 0x135   :  { %v643_v34 = vmax.f32 %v591_v30, 0.0  ;;  %v621_v58 = vadd.f32 %v620_v33, %v532_v29 }
 0x136   :  { %v414_v35 = vpop.f32.mrf.mxu0 }
 0x137   :  { %675 = vst [vmem:[%s1377_s3 + $0x90] sm:$0xff] %v643_v34  ;;  %v655_v36 = vmax.f32 %v621_v58, 0.0  ;;  %v415_v37 = vadd.f32 %v1129_v3, %v414_v35  ;;  %v503_v31 = vpop.f32.mrf.mxu1 }
 0x139   :  { %687 = vst [vmem:[%s1377_s3 + $0xf0] sm:$0xff] %v655_v36  ;;  %v504_v39 = vadd.f32 %v503_v31, %v415_v37 }
 0x13a   :  { %v597_v40 = vpop.f32.mrf.mxu2 }
 0x13b   :  { %v593_v42 = vadd.f32 %v592_v16, %v504_v39 }
 0x13c   :  { %v622_v45 = vpop.f32.mrf.mxu3 }
 0x13d   :  { %v644_v46 = vmax.f32 %v593_v42, 0.0  ;;  %v623_v47 = vadd.f32 %v622_v45, %v534_v41 }
 0x13e   :  { %v417_v48 = vpop.f32.mrf.mxu0 }
 0x13f   :  { %676 = vst [vmem:[%s1377_s3 + $0x98] sm:$0xff] %v644_v46  ;;  %v656_v49 = vmax.f32 %v623_v47, 0.0  ;;  %v418_v50 = vadd.f32 %v1129_v3, %v417_v48  ;;  %v506_v44 = vpop.f32.mrf.mxu1 }
 0x141   :  { %688 = vst [vmem:[%s1377_s3 + $0xf8] sm:$0xff] %v656_v49  ;;  %v507_v51 = vadd.f32 %v506_v44, %v418_v50 }
 0x142   :  { %v600_v52 = vpop.f32.mrf.mxu2 }
 0x143   :  { %v596_v53 = vadd.f32 %v595_v28, %v507_v51 }
 0x145   :  { %v645_v54 = vmax.f32 %v596_v53, 0.0 }
 0x146   :  { %v419_v56 = vpop.f32.mrf.mxu0 }
 0x147   :  { %677 = vst [vmem:[%s1377_s3 + $0xa0] sm:$0xff] %v645_v54  ;;  %v420_v57 = vadd.f32 %v1129_v3, %v419_v56  ;;  %v508_v59 = vpop.f32.mrf.mxu1 }
 0x149   :  { %v509_v60 = vadd.f32 %v508_v59, %v420_v57 }
 0x14a   :  { %v602_v61 = vpop.f32.mrf.mxu2 }
 0x14b   :  { %v598_v62 = vadd.f32 %v597_v40, %v509_v60 }
 0x14d   :  { %v646_v63 = vmax.f32 %v598_v62, 0.0 }
 0x14e   :  { %v422_v15 = vpop.f32.mrf.mxu0 }
 0x14f   :  { %678 = vst [vmem:[%s1377_s3 + $0xa8] sm:$0xff] %v646_v63  ;;  %v423_v0 = vadd.f32 %v1129_v3, %v422_v15  ;;  %v511_v2 = vpop.f32.mrf.mxu1 }
 0x151   :  { %v512_v4 = vadd.f32 %v511_v2, %v423_v0 }
 0x152   :  { %v605_v6 = vpop.f32.mrf.mxu2 }
 0x153   :  { %v601_v7 = vadd.f32 %v600_v52, %v512_v4  ;;  %v606_v8 = vadd.f32 %v605_v6, %v1261_v55 }
 0x155   :  { %v647_v9 = vmax.f32 %v601_v7, 0.0  ;;  %v649_v10 = vmax.f32 %v606_v8, 0.0 }
 0x156   :  { %v424_v32 = vpop.f32.mrf.mxu0 }
 0x157   :  { %679 = vst [vmem:[%s1377_s3 + $0xb0] sm:$0xff] %v647_v9  ;;  %v425_v11 = vadd.f32 %v1129_v3, %v424_v32  ;;  %v513_v13 = vpop.f32.mrf.mxu1 }
 0x158   :  { %681 = vst [vmem:[%s1377_s3 + $0xc0] sm:$0xff] %v649_v10 }
 0x159   :  { %v514_v14 = vadd.f32 %v513_v13, %v425_v11 }
 0x15a   :  { %v607_v5 = vpop.f32.mrf.mxu2 }
 0x15b   :  { %v603_v16 = vadd.f32 %v602_v61, %v514_v14  ;;  %v608_v17 = vadd.f32 %v607_v5, %v1269_v1 }
 0x15d   :  { %v648_v55 = vmax.f32 %v603_v16, 0.0  ;;  %v650_v18 = vmax.f32 %v608_v17, 0.0 }
 0x15f   :  { %680 = vst [vmem:[%s1377_s3 + $0xb8] sm:$0xff] %v648_v55 }
 0x160   :  { %682 = vst [vmem:[%s1377_s3 + $0xc8] sm:$0xff] %v650_v18 }
 0x162   :  { %v610_v3 = vpop.f32.mrf.mxu2 }
 0x163   :  { %v611_v19 = vadd.f32 %v610_v3, %v1277_v12 }
 0x165   :  { %v651_v20 = vmax.f32 %v611_v19, 0.0 }
 0x167   :  { %683 = vst [vmem:[%s1377_s3 + $0xd0] sm:$0xff] %v651_v20 }
 0x16a   :  { %v612_v43 = vpop.f32.mrf.mxu2 }
 0x16b   :  { %v613_v1 = vadd.f32 %v612_v43, %v1285_v23 }
 0x16d   :  { %v652_v22 = vmax.f32 %v613_v1, 0.0 }
 0x16f   :  { %684 = vst [vmem:[%s1377_s3 + $0xd8] sm:$0xff] %v652_v22 }

</bundles_post_ra>
